<compile_context>
chip_gen: v7x
topology: tpu7x:2x2x1
jax: 0.10.0
libtpu: 0.0.40
codegen_flags: <defaults>
</compile_context>

<pallas_src>
import functools

import jax
import jax.numpy as jnp
from jax.experimental import pallas as pl
from jax.experimental.pallas import tpu as pltpu

MARGIN = 1.0
EPS = 1e-6  # PyTorch F.pairwise_distance eps


@functools.lru_cache(maxsize=None)
def _vmem_budgets():
    """Generation-aware (vmem_limit_bytes, pipelined-buffer byte budget)."""
    try:
        phys = int(pltpu.get_tpu_info().vmem_capacity_bytes)
    except Exception:
        # Query unavailable -> assume the smallest generation (v7x, 64 MiB).
        phys = 64 * 1024 * 1024
    vmem_limit = phys // 2            # 64 MiB on v5e/v6e (128 MiB phys), 32 MiB on v7x
    buffer_budget = (phys * 3) // 8   # 48 MiB on v5e/v6e, 24 MiB on v7x
    return vmem_limit, buffer_budget


def _choose_block_rows(n, d, itemsize):
    """Largest packing-aligned row tile whose pipelined buffers fit the budget."""
    d_lanes = ((d + 127) // 128) * 128            # lane padding of the input tiles
    # 3 inputs x 2 pipeline buffers, plus the f32 (tn, 1) output block which
    # occupies one (8, 128) f32 tile per 8 rows in VMEM (512 B/row) x 2 buffers.
    per_row_bytes = 6 * d_lanes * itemsize + 2 * 512
    _, budget = _vmem_budgets()
    cap = max(1, budget // per_row_bytes)
    packing = max(8, 32 // itemsize)              # sublane packing: 8 f32 / 16 bf16 / 32 i8
    cap = max(packing, (cap // packing) * packing)
    n_up = ((n + packing - 1) // packing) * packing
    return min(cap, n_up)


def _triplet_per_sample_kernel(a_ref, p_ref, n_ref, out_ref, *, margin):
    """Per-sample triplet margin loss for one (TN, D) tile.

    Rows past the true batch size in the (possibly partial) last tile produce
    garbage values, but Pallas drops the corresponding output rows, so no
    masking is required.
    """
    a = a_ref[...].astype(jnp.float32)
    p = p_ref[...].astype(jnp.float32)
    n = n_ref[...].astype(jnp.float32)

    diff_ap = a - p + EPS
    diff_an = a - n + EPS
    d_ap = jnp.sqrt(jnp.sum(diff_ap * diff_ap, axis=1, keepdims=True))  # [TN, 1]
    d_an = jnp.sqrt(jnp.sum(diff_an * diff_an, axis=1, keepdims=True))  # [TN, 1]
    out_ref[...] = jnp.maximum(d_ap - d_an + margin, jnp.float32(0.0))


def triplet_loss(anchor, positive, negative, *, margin=MARGIN, reduction="mean",
                 block_rows=None):
    """Pallas implementation of TripletLoss.forward (margin triplet loss, p=2)."""
    if reduction not in ("mean", "sum", "none"):
        raise ValueError(f"Unsupported reduction type: {reduction}")
    assert anchor.ndim == 2
    assert anchor.shape == positive.shape == negative.shape

    N, D = anchor.shape
    itemsize = jnp.dtype(anchor.dtype).itemsize
    tn = block_rows if block_rows is not None else _choose_block_rows(N, D, itemsize)
    assert tn % 8 == 0 or tn == N, "block_rows must be a multiple of 8 (or == N)"
    grid = pl.cdiv(N, tn)

    vmem_limit, _ = _vmem_budgets()
    cost = pl.CostEstimate(
        flops=8 * N * D,                               # 2x (sub, square, accumulate) + epilogue
        transcendentals=2 * N,                         # two sqrt per sample
        bytes_accessed=3 * N * D * itemsize + N * 4,   # stream 3 inputs, write f32 losses
    )

    in_spec = pl.BlockSpec((tn, D), lambda i: (i, 0))
    per_sample = pl.pallas_call(
        functools.partial(_triplet_per_sample_kernel, margin=float(margin)),
        out_shape=jax.ShapeDtypeStruct((N, 1), jnp.float32),
        grid_spec=pltpu.PrefetchScalarGridSpec(
            num_scalar_prefetch=0,
            grid=(grid,),
            in_specs=[in_spec, in_spec, in_spec],
            out_specs=pl.BlockSpec((tn, 1), lambda i: (i, 0)),
        ),
        compiler_params=pltpu.CompilerParams(
            dimension_semantics=("parallel",),
            vmem_limit_bytes=vmem_limit,
        ),
        cost_estimate=cost,
    )(anchor, positive, negative)

    per_sample = per_sample[:, 0]
    if reduction == "mean":
        return jnp.mean(per_sample)
    if reduction == "sum":
        return jnp.sum(per_sample)
    # torch returns per-sample losses in the input dtype for reduction='none'.
    return per_sample.astype(anchor.dtype)


def _triplet_loss_ref(anchor, positive, negative, *, margin=MARGIN,
                      reduction="mean"):
    a = anchor.astype(jnp.float32)
    p = positive.astype(jnp.float32)
    n = negative.astype(jnp.float32)
    d_ap = jnp.sqrt(jnp.sum((a - p + EPS) ** 2, axis=1))
    d_an = jnp.sqrt(jnp.sum((a - n + EPS) ** 2, axis=1))
    per = jnp.maximum(d_ap - d_an + margin, 0.0)
    if reduction == "mean":
        return jnp.mean(per)
    if reduction == "sum":
        return jnp.sum(per)
    return per


if __name__ == "__main__":
    key = jax.random.PRNGKey(0)
    ka, kp, kn = jax.random.split(key, 3)

    # Small [N, D] triplets, matching the module's forward signature.
    N, D = 8, 32
    anchor = jax.random.normal(ka, (N, D), dtype=jnp.float32)
    positive = jax.random.normal(kp, (N, D), dtype=jnp.float32)
    negative = jax.random.normal(kn, (N, D), dtype=jnp.float32)

    loss = jax.block_until_ready(
        triplet_loss(anchor, positive, negative, margin=MARGIN, reduction="mean"))
    ref = _triplet_loss_ref(anchor, positive, negative, margin=MARGIN,
                            reduction="mean")
    assert jnp.allclose(loss, ref, atol=1e-5, rtol=1e-5), (loss, ref)

    # Ragged N (partial last block, no wrapper padding) across all reductions.
    k2a, k2p, k2n = jax.random.split(jax.random.PRNGKey(1), 3)
    N2, D2 = 13, 32
    a2 = jax.random.normal(k2a, (N2, D2), dtype=jnp.float32)
    p2 = jax.random.normal(k2p, (N2, D2), dtype=jnp.float32)
    n2 = jax.random.normal(k2n, (N2, D2), dtype=jnp.float32)
    for red in ("mean", "sum", "none"):
        got = jax.block_until_ready(
            triplet_loss(a2, p2, n2, margin=MARGIN, reduction=red))
        want = _triplet_loss_ref(a2, p2, n2, margin=MARGIN, reduction=red)
        assert jnp.allclose(got, want, atol=1e-5, rtol=1e-5), (red, got, want)

    # Multi-step grid with a ragged last tile (forced small block_rows).
    k3a, k3p, k3n = jax.random.split(jax.random.PRNGKey(2), 3)
    N3, D3 = 40, 32
    a3 = jax.random.normal(k3a, (N3, D3), dtype=jnp.float32)
    p3 = jax.random.normal(k3p, (N3, D3), dtype=jnp.float32)
    n3 = jax.random.normal(k3n, (N3, D3), dtype=jnp.float32)
    got = jax.block_until_ready(
        triplet_loss(a3, p3, n3, margin=MARGIN, reduction="mean", block_rows=16))
    want = _triplet_loss_ref(a3, p3, n3, margin=MARGIN, reduction="mean")
    assert jnp.allclose(got, want, atol=1e-5, rtol=1e-5), (got, want)

    print("KERNEL_OK")
</pallas_src>

<mosaic_0001>
module attributes {stable_mosaic.version = 11 : i64} {
  func.func @_triplet_per_sample_kernel(%arg0: i32, %arg1: memref<8x32xf32, #tpu.memory_space<vmem>>, %arg2: memref<8x32xf32, #tpu.memory_space<vmem>>, %arg3: memref<8x32xf32, #tpu.memory_space<vmem>>, %arg4: memref<8x1xf32, #tpu.memory_space<vmem>>) attributes {dimension_semantics = [#tpu.dimension_semantics<parallel>], iteration_bounds = array<i64: 1>, scalar_prefetch = 0 : i64, scratch_operands = 0 : i64, tpu.core_type = #tpu.core_type<tc>, window_params = [{transform_indices = @transform_0, window_bounds = array<i64: 8, 32>}, {transform_indices = @transform_1, window_bounds = array<i64: 8, 32>}, {transform_indices = @transform_2, window_bounds = array<i64: 8, 32>}, {transform_indices = @transform_3, window_bounds = array<i64: 8, 1>}]} {
    %c0 = arith.constant 0 : index
    %c0_0 = arith.constant 0 : index
    %0 = vector.load %arg1[%c0, %c0_0] : memref<8x32xf32, #tpu.memory_space<vmem>>, vector<8x32xf32>
    %c0_1 = arith.constant 0 : index
    %c0_2 = arith.constant 0 : index
    %1 = vector.load %arg2[%c0_1, %c0_2] : memref<8x32xf32, #tpu.memory_space<vmem>>, vector<8x32xf32>
    %c0_3 = arith.constant 0 : index
    %c0_4 = arith.constant 0 : index
    %2 = vector.load %arg3[%c0_3, %c0_4] : memref<8x32xf32, #tpu.memory_space<vmem>>, vector<8x32xf32>
    %3 = arith.subf %0, %1 : vector<8x32xf32>
    %cst = arith.constant 9.99999997E-7 : f32
    %4 = vector.broadcast %cst : f32 to vector<8x32xf32>
    %5 = arith.addf %3, %4 : vector<8x32xf32>
    %6 = arith.subf %0, %2 : vector<8x32xf32>
    %cst_5 = arith.constant 9.99999997E-7 : f32
    %7 = vector.broadcast %cst_5 : f32 to vector<8x32xf32>
    %8 = arith.addf %6, %7 : vector<8x32xf32>
    %9 = arith.mulf %5, %5 : vector<8x32xf32>
    %cst_6 = arith.constant dense<0.000000e+00> : vector<8xf32>
    %10 = vector.multi_reduction <add>, %9, %cst_6 [1] : vector<8x32xf32> to vector<8xf32>
    %11 = vector.shape_cast %10 : vector<8xf32> to vector<8x1xf32>
    %12 = math.sqrt %11 : vector<8x1xf32>
    %13 = arith.mulf %8, %8 : vector<8x32xf32>
    %cst_7 = arith.constant dense<0.000000e+00> : vector<8xf32>
    %14 = vector.multi_reduction <add>, %13, %cst_7 [1] : vector<8x32xf32> to vector<8xf32>
    %15 = vector.shape_cast %14 : vector<8xf32> to vector<8x1xf32>
    %16 = math.sqrt %15 : vector<8x1xf32>
    %17 = arith.subf %12, %16 : vector<8x1xf32>
    %cst_8 = arith.constant 1.000000e+00 : f32
    %18 = vector.broadcast %cst_8 : f32 to vector<8x1xf32>
    %19 = arith.addf %17, %18 : vector<8x1xf32>
    %cst_9 = arith.constant 0.000000e+00 : f32
    %20 = vector.broadcast %cst_9 : f32 to vector<8x1xf32>
    %21 = arith.maximumf %19, %20 : vector<8x1xf32>
    %c0_10 = arith.constant 0 : index
    %c0_11 = arith.constant 0 : index
    %22 = vector.load %arg4[%c0_10, %c0_11] : memref<8x1xf32, #tpu.memory_space<vmem>>, vector<8x1xf32>
    tpu.vector_store %arg4[%c0_10, %c0_11], %21 {strides = array<i32>} : memref<8x1xf32, #tpu.memory_space<vmem>>, vector<8x1xf32>,
    return
  }
  func.func @transform_0(%arg0: i32) -> (i32, i32) {
    %c0_i32 = arith.constant 0 : i32
    %c0_i32_0 = arith.constant 0 : i32
    return %arg0, %c0_i32 : i32, i32
  }
  func.func @transform_1(%arg0: i32) -> (i32, i32) {
    %c0_i32 = arith.constant 0 : i32
    %c0_i32_0 = arith.constant 0 : i32
    return %arg0, %c0_i32 : i32, i32
  }
  func.func @transform_2(%arg0: i32) -> (i32, i32) {
    %c0_i32 = arith.constant 0 : i32
    %c0_i32_0 = arith.constant 0 : i32
    return %arg0, %c0_i32 : i32, i32
  }
  func.func @transform_3(%arg0: i32) -> (i32, i32) {
    %c0_i32 = arith.constant 0 : i32
    %c0_i32_0 = arith.constant 0 : i32
    return %arg0, %c0_i32 : i32, i32
  }
}

</mosaic_0001>

<bundles_post_ra>
// kernel: tpu_custom_call.1
= control target key start
LH: loop header
LB: loop body
LE: loop exit
PB: predicated region body
PF: predicated region fallthrough
CT: control target
= control target key end

     0   :  { %8 = vsyncpa [#allocation3], 0  ;;  %s229_s0 = inlined_call_operand.hbm [shape: f32[8,32], index: 0, kind: input, shape index: {}]   ;;  %s230_s1 = inlined_call_operand.hbm [shape: f32[8,32], index: 1, kind: input, shape index: {}]   ;;  %s231_s2 = inlined_call_operand.hbm [shape: f32[8,32], index: 2, kind: input, shape index: {}]   ;;  %s232_s3 = inlined_call_operand.vmem [shape: f32[8,1], index: 3, kind: output, shape index: {}]  }
   0x1   :  { %9 = vsyncpa [#allocation5], 0  ;;  %s167_s12 = smov [#allocation4]   ;;  %s168_s14 = smov [#allocation2]  }
   0x2   :  { %s26_s13 = sshll.u32 %s167_s12, 4  ;;  %s16_s15 = sshll.u32 %s168_s14, 4  ;;  %s27_s13 = int_to_ptr.vmem [resolvable:$true] %s26_s13  ;;  %s17_s15 = int_to_ptr.vmem [resolvable:$true] %s16_s15 }
   0x3   :  { %s97_s18 = scalar_lea.hbm %s230_s1, 128 }
   0x4   :  { %p98_p0 = scmp.ne.s32.totalorder %s230_s1, %s97_s18  ;;  %p101_p1 = scmp.lt.u32.totalorder %s97_s18, %s230_s1 }
   0x6   :  { %p103_p2 = pnand %p101_p1, %p98_p0 }
   0x8   :  { %106 = shalt.err (!%p103_p2)
}
   0x9   :  { %s107_s23 = scalar_lea.vmem %s27_s13, 128  ;;  %p112_p4 = scmp.lt.s32.totalorder %s27_s13, %s27_s13 }
   0xa   :  { %p108_p3 = scmp.ne.s32.totalorder %s27_s13, %s107_s23  ;;  %p113_p5 = scmp.lt.s32.totalorder %s107_s23, %s107_s23 }
   0xc   :  { %p114_p6 = por %p113_p5, %p112_p4 }
   0xe   :  { %p115_p7 = pnand %p114_p6, %p108_p3 }
  0x10   :  { %118 = shalt.err (!%p115_p7)
}
  0x11   :  { %29 = dma.hbm_to_vmem [thread:$0]  %s230_s1, 128, %s27_s13, [#allocation5]  }
  0x12   :  { %s119_s28 = scalar_lea.hbm %s229_s0, 128 }
  0x13   :  { %p120_p8 = scmp.ne.s32.totalorder %s229_s0, %s119_s28  ;;  %p123_p9 = scmp.lt.u32.totalorder %s119_s28, %s229_s0 }
  0x15   :  { %p125_p10 = pnand %p123_p9, %p120_p8 }
  0x17   :  { %128 = shalt.err (!%p125_p10)
}
  0x18   :  { %s129_s6 = scalar_lea.vmem %s17_s15, 128  ;;  %p134_p12 = scmp.lt.s32.totalorder %s17_s15, %s17_s15 }
  0x19   :  { %p130_p11 = scmp.ne.s32.totalorder %s17_s15, %s129_s6  ;;  %p135_p13 = scmp.lt.s32.totalorder %s129_s6, %s129_s6 }
  0x1b   :  { %p136_p0 = por %p135_p13, %p134_p12 }
  0x1d   :  { %p137_p1 = pnand %p136_p0, %p130_p11 }
  0x1f   :  { %140 = shalt.err (!%p137_p1)
}
  0x20   :  { %19 = dma.hbm_to_vmem [thread:$0]  %s229_s0, 128, %s17_s15, [#allocation3]  }
  0x21   :  { %s169_s8 = smov [#allocation6]   ;;  %s141_s12 = scalar_lea.hbm %s231_s2, 128 }
  0x22   :  { %s36_s9 = sshll.u32 %s169_s8, 4  ;;  %p142_p2 = scmp.ne.s32.totalorder %s231_s2, %s141_s12  ;;  %s37_s9 = int_to_ptr.vmem [resolvable:$true] %s36_s9 }
  0x23   :  { %p145_p3 = scmp.lt.u32.totalorder %s141_s12, %s231_s2 }
  0x25   :  { %p147_p4 = pnand %p145_p3, %p142_p2 }
  0x27   :  { %150 = shalt.err (!%p147_p4)
}
  0x28   :  { %s151_s18 = scalar_lea.vmem %s37_s9, 128  ;;  %p156_p6 = scmp.lt.s32.totalorder %s37_s9, %s37_s9 }
  0x29   :  { %p152_p5 = scmp.ne.s32.totalorder %s37_s9, %s151_s18  ;;  %p157_p7 = scmp.lt.s32.totalorder %s151_s18, %s151_s18 }
  0x2b   :  { %p158_p8 = por %p157_p7, %p156_p6 }
  0x2d   :  { %p159_p9 = pnand %p158_p8, %p152_p5 }
  0x2f   :  { %162 = shalt.err (!%p159_p9)
}
  0x30   :  { %39 = dma.hbm_to_vmem [thread:$0]  %s231_s2, 128, %s37_s9, [#allocation5]  }
  0x31   :  { %163 = dma.done.wait [#allocation3], 128  }
  0x32   :  { %164 = vsyncadd [#allocation3], 4294967168 }
  0x33   :  { %165 = dma.done.wait [#allocation5], 256  }
  0x34   :  { %166 = vsyncadd [#allocation5], 4294967040  ;;  %v49_v0 = vld [vmem:[#allocation2] sm:$0xff]  ;;  %v50_v1 = vld [vmem:[#allocation4] sm:$0xff]  ;;  %vm57_vm0 = vcmask 261120   ;;  %vm82_vm5 = vcmask 7168  }
  0x35   :  { %v51_v2 = vld [vmem:[#allocation6] sm:$0xff]  ;;  %v52_v3 = vsub.f32 %v49_v0, %v50_v1 }
  0x36   :  { %v54_v4 = vsub.f32 %v49_v0, %v51_v2 }
  0x37   :  { %v53_v5 = vadd.f32 1e-06, %v52_v3 }
  0x38   :  { %v55_v6 = vadd.f32 1e-06, %v54_v4 }
  0x39   :  { %v56_v7 = vmul.f32 %v53_v5, %v53_v5 }
  0x3a   :  { %v68_v8 = vmul.f32 %v55_v6, %v55_v6 }
  0x3b   :  { %v58_v9 = vsel %vm57_vm0, %v56_v7, 0.0 }
  0x3c   :  { %59 = vadd.xlane.f32.xlu0 %v58_v9  ;;  %v69_v10 = vsel %vm57_vm0, %v68_v8, 0.0 }
  0x40   :  { %70 = vadd.xlane.f32.xlu0 %v69_v10 }
  0xc9   :  { %v60_v11 = vpop.xlane.xlu0 %59 }
  0xca   :  { %93 = vrsqrt.f32 %v60_v11  ;;  %vm63_vm1 = vcmp.eq.f32.partialorder %v60_v11, inf  ;;  %v66_v18 = vand.u32 2147483648, %v60_v11  ;;  %vm65_vm3 = vcmp.eq.f32.partialorder %v60_v11, 0.0 }
  0xcd   :  { %v71_v12 = vpop.xlane.xlu0 %70 }
  0xce   :  { %95 = vrsqrt.f32 %v71_v12  ;;  %vm74_vm2 = vcmp.eq.f32.partialorder %v71_v12, inf  ;;  %v77_v19 = vand.u32 2147483648, %v71_v12  ;;  %vm76_vm4 = vcmp.eq.f32.partialorder %v71_v12, 0.0 }
  0xd4   :  { %v94_v13 = vpop.eup %93 }
  0xd5   :  { %v62_v14 = vmul.f32 %v94_v13, %v60_v11 }
  0xd7   :  { %v64_v16 = vsel %vm63_vm1, %v60_v11, %v62_v14 }
  0xd8   :  { %v96_v15 = vpop.eup %95  ;;  %v67_v21 = vsel %vm65_vm3, %v66_v18, %v64_v16 }
  0xd9   :  { %v73_v17 = vmul.f32 %v96_v15, %v71_v12 }
  0xdb   :  { %v75_v20 = vsel %vm74_vm2, %v71_v12, %v73_v17 }
  0xdc   :  { %v78_v22 = vsel %vm76_vm4, %v77_v19, %v75_v20 }
  0xdd   :  { %v79_v23 = vsub.f32 %v67_v21, %v78_v22 }
  0xdf   :  { %v80_v24 = vadd.f32 1.0, %v79_v23 }
  0xe1   :  { %v81_v25 = vmax.f32 %v80_v24, 0.0 }
  0xe3   :  { %83 = vst.msk [vmem:[%s232_s3] sm:$0xff] %vm82_vm5, %v81_v25 }
  0xe4   :  { %88 = vsyncpa [#allocation3], 1 }
  0xe5   :  { %89 = vsyncpa [#allocation5], 1 }

</bundles_post_ra>
